<compile_context>
chip_gen: v7x
topology: tpu7x:2x2x1
jax: 0.10.0
libtpu: 0.0.40
codegen_flags: <defaults>
</compile_context>

<pallas_src>
import jax
import jax.numpy as jnp
import numpy as np
from jax.experimental import pallas as pl
from jax.experimental.pallas import tpu as pltpu

LEAKY_SLOPE = 0.01   # torch.nn.LeakyReLU default negative_slope
BN_EPS = 1e-5        # torch_geometric BatchNorm default eps
OUT_LANES = 128      # final output padded to a full lane tile (lane-dense store)


# ----------------------------- Pallas kernel --------------------------------

def _make_fused_gnn_kernel(num_hidden, hop_counts):
    """Fused kernel (one batch element per grid step):
    num_hidden x (TAGConv + folded-BN/bias + LeakyyReLU) followed by one
    TAGConv + sigmoid box-constraint.

    Ref order (all whole-array VMEM blocks; batch dim squeezed out of x/out):
      refs[0]  x      (N, F0)            f32   (per-batch block)
      refs[1]  A      (N, N)             bf16  (constant block, resident)
      per hidden layer l:  W_{l,0..K_l} (Fin_l, Fout_l) bf16,
                           scale_l (N, Fout_l) f32, shift_l (N, Fout_l) f32
      final layer:         Wf_{0..K}   (Fin, 128) bf16 (pre-scaled by 1/10),
                           b_f (1, 128) f32, vmin (N, 128) f32, vmax (N, 128) f32
      last ref             out  (N, 128) f32   (per-batch block)
    """

    def kernel(*refs):
        x_ref, a_ref = refs[0], refs[1]
        rest = refs[2:]

        a = a_ref[...]                                   # (N, N) bf16
        z = x_ref[...]                                   # (N, F0) f32

        def tagconv(z, w_refs):
            """sum_k (A^k z) @ W_k, bf16 MXU operands, f32 accumulation;
            the serial hop chain stays in vregs (no VMEM scratch)."""
            acc = jnp.dot(z.astype(jnp.bfloat16), w_refs[0][...],
                          preferred_element_type=jnp.float32)
            zk = z
            for k in range(1, len(w_refs)):
                zk = jnp.dot(a, zk.astype(jnp.bfloat16),
                             preferred_element_type=jnp.float32)
                acc = acc + jnp.dot(zk.astype(jnp.bfloat16), w_refs[k][...],
                                    preferred_element_type=jnp.float32)
            return acc

        idx = 0
        for l in range(num_hidden):
            nw = hop_counts[l] + 1
            w_refs = rest[idx:idx + nw]
            s_ref, t_ref = rest[idx + nw], rest[idx + nw + 1]
            idx += nw + 2
            acc = tagconv(z, w_refs)
            y = acc * s_ref[...] + t_ref[...]            # folded BatchNorm + conv bias
            z = jnp.where(y >= 0.0, y, LEAKY_SLOPE * y)  # LeakyReLU
            # Dropout: identity in eval mode.
            # TODO(synk): training-mode dropout / batch-stats BN not implemented.

        nw = hop_counts[-1] + 1
        w_refs = rest[idx:idx + nw]
        bf_ref, vmin_ref, vmax_ref, o_ref = rest[idx + nw:idx + nw + 4]
        u = tagconv(z, w_refs) + bf_ref[...]             # weights/bias pre-scaled by 1/10
        vmin = vmin_ref[...]
        vmax = vmax_ref[...]
        o_ref[...] = vmin + (vmax - vmin) * jax.nn.sigmoid(u)   # lane-dense store

    return kernel


# ------------------------------- glue (JAX) ----------------------------------

def gcn_norm_dense(edge_index, num_nodes):
    """Dense D^{-1/2} A D^{-1/2} matching PyG gcn_norm(add_self_loops=False),
    unit edge weights.  Scatter-add so duplicate edges accumulate."""
    src, dst = edge_index[0], edge_index[1]
    A = jnp.zeros((num_nodes, num_nodes), jnp.float32).at[dst, src].add(1.0)
    deg = jnp.sum(A, axis=1)
    d_inv_sqrt = jnp.where(deg > 0, 1.0 / jnp.sqrt(deg), 0.0)
    return d_inv_sqrt[:, None] * A * d_inv_sqrt[None, :]


def gnn_unsupervised_forward(x, a_norm, params, val_min, val_max):
    """Eval-mode forward of GNNUnsupervised as a single fused Pallas call."""
    B, N, F0 = x.shape
    num_layers = len(params["W"])
    num_hidden = num_layers - 1
    hop_counts = [int(params["W"][l].shape[0]) - 1 for l in range(num_layers)]
    fan_ins = [int(params["W"][l].shape[1]) for l in range(num_layers)]
    fan_outs = [int(params["W"][l].shape[2]) for l in range(num_layers)]
    out_dim = fan_outs[-1]
    assert out_dim <= OUT_LANES, "final output width must fit one lane tile"

    def const_spec(arr):
        zeros = (0,) * arr.ndim
        return pl.BlockSpec(tuple(arr.shape), lambda b: zeros)

    # --- host-side prep (plain XLA ops; nothing tiled by B) ---
    args = [x.astype(jnp.float32), a_norm.astype(jnp.bfloat16)]
    in_specs = [
        pl.BlockSpec((None, N, F0), lambda b: (b, 0, 0)),   # per-batch block
        const_spec(args[1]),                                # A resident
    ]

    for l in range(num_hidden):
        W, bias = params["W"][l], params["b"][l]
        fout = fan_outs[l]
        for k in range(hop_counts[l] + 1):
            wk = W[k].astype(jnp.bfloat16)                  # (Fin, Fout)
            args.append(wk)
            in_specs.append(const_spec(wk))
        gamma, beta = params["bn_gamma"][l], params["bn_beta"][l]
        mean, var = params["bn_mean"][l], params["bn_var"][l]
        inv_std_flat = gamma / jnp.sqrt(var + BN_EPS)
        inv_std = inv_std_flat.reshape(N, fout)
        shift = (beta - mean * inv_std_flat).reshape(N, fout)
        shift = shift + bias[None, :] * inv_std             # fold conv bias into BN shift
        args += [inv_std.astype(jnp.float32), shift.astype(jnp.float32)]
        in_specs += [const_spec(args[-2]), const_spec(args[-1])]

    Wf, bf = params["W"][-1], params["b"][-1]
    for k in range(hop_counts[-1] + 1):
        wk = jnp.zeros((fan_ins[-1], OUT_LANES), jnp.float32)
        wk = wk.at[:, :out_dim].set(Wf[k] / 10.0)           # fold /10 into weights
        wk = wk.astype(jnp.bfloat16)
        args.append(wk)
        in_specs.append(const_spec(wk))
    bf_pad = jnp.zeros((1, OUT_LANES), jnp.float32).at[:, :out_dim].set(bf / 10.0)
    vmin_pad = jnp.zeros((N, OUT_LANES), jnp.float32).at[:, :out_dim].set(val_min)
    vmax_pad = jnp.zeros((N, OUT_LANES), jnp.float32).at[:, :out_dim].set(val_max)
    args += [bf_pad, vmin_pad, vmax_pad]
    in_specs += [const_spec(bf_pad), const_spec(vmin_pad), const_spec(vmax_pad)]

    # --- cost estimate & explicit VMEM budget ---
    flops = 0
    for l in range(num_layers):
        K, fin, fout = hop_counts[l], fan_ins[l], fan_outs[l]
        flops += B * (2 * K * N * N * fin + 2 * (K + 1) * N * fin * fout)
    arg_bytes = sum(int(np.prod(a_.shape)) * a_.dtype.itemsize for a_ in args)
    out_bytes = B * N * OUT_LANES * 4
    cost = pl.CostEstimate(flops=flops,
                           transcendentals=B * N * out_dim,
                           bytes_accessed=arg_bytes + out_bytes)
    vmem_limit = int(min(64 << 20, max(4 << 20, 4 * (arg_bytes + out_bytes))))

    kernel = _make_fused_gnn_kernel(num_hidden, hop_counts)
    out_pad = pl.pallas_call(
        kernel,
        out_shape=jax.ShapeDtypeStruct((B, N, OUT_LANES), jnp.float32),
        grid=(B,),
        in_specs=in_specs,
        out_specs=pl.BlockSpec((None, N, OUT_LANES), lambda b: (b, 0, 0)),
        compiler_params=pltpu.CompilerParams(
            dimension_semantics=("parallel",),   # batch shards across TCs on v7x
            vmem_limit_bytes=vmem_limit),
        cost_estimate=cost,
    )(*args)
    return out_pad[:, :, :out_dim]


def reference_forward(x, a_norm, params, val_min, val_max):
    """Pure-JAX f32 reference matching the PyTorch semantics (eval mode)."""
    num_layers = len(params["W"])
    N = x.shape[1]
    out = x
    for layer in range(num_layers - 1):
        W, b = params["W"][layer], params["b"][layer]
        Fout = W.shape[-1]
        z = out
        acc = jnp.einsum("bnf,fo->bno", z, W[0])
        for k in range(1, W.shape[0]):
            z = jnp.einsum("mn,bnf->bmf", a_norm, z)
            acc = acc + jnp.einsum("bnf,fo->bno", z, W[k])
        acc = acc + b
        gamma, beta = params["bn_gamma"][layer], params["bn_beta"][layer]
        mean, var = params["bn_mean"][layer], params["bn_var"][layer]
        flat = acc.reshape(-1, N * Fout)
        flat = (flat - mean) / jnp.sqrt(var + BN_EPS) * gamma + beta
        acc = flat.reshape(-1, N, Fout)
        out = jnp.where(acc >= 0.0, acc, LEAKY_SLOPE * acc)
    W, b = params["W"][-1], params["b"][-1]
    z = out
    acc = jnp.einsum("bnf,fo->bno", z, W[0])
    for k in range(1, W.shape[0]):
        z = jnp.einsum("mn,bnf->bmf", a_norm, z)
        acc = acc + jnp.einsum("bnf,fo->bno", z, W[k])
    acc = acc + b
    return val_min[None] + (val_max - val_min)[None] * jax.nn.sigmoid(acc / 10.0)


# --------------------------------- main --------------------------------------

if __name__ == "__main__":
    key = jax.random.PRNGKey(0)

    B, N = 2, 16
    dims = [4, 32, 32, 3]      # dim[layer] -> dim[layer+1]
    Ks = [2, 2, 2]             # TAGConv hop count per layer
    num_layers = len(Ks)

    # Undirected ring graph on N nodes.
    src = jnp.arange(N, dtype=jnp.int32)
    dst = (src + 1) % N
    edge_index = jnp.stack(
        [jnp.concatenate([src, dst]), jnp.concatenate([dst, src])], axis=0)
    a_norm = gcn_norm_dense(edge_index, N)

    # Deterministic parameter init.
    keys = iter(jax.random.split(key, 64))
    params = {"W": [], "b": [], "bn_gamma": [], "bn_beta": [],
              "bn_mean": [], "bn_var": []}
    for layer in range(num_layers):
        fin, fout = dims[layer], dims[layer + 1]
        params["W"].append(
            jax.random.normal(next(keys), (Ks[layer] + 1, fin, fout),
                              jnp.float32) * 0.2)
        params["b"].append(
            jax.random.normal(next(keys), (fout,), jnp.float32) * 0.1)
        if layer < num_layers - 1:
            nf = N * fout
            params["bn_gamma"].append(
                1.0 + 0.1 * jax.random.normal(next(keys), (nf,), jnp.float32))
            params["bn_beta"].append(
                0.1 * jax.random.normal(next(keys), (nf,), jnp.float32))
            params["bn_mean"].append(
                0.1 * jax.random.normal(next(keys), (nf,), jnp.float32))
            params["bn_var"].append(
                0.5 + jnp.abs(jax.random.normal(next(keys), (nf,), jnp.float32)))

    val_min = -jnp.abs(jax.random.normal(next(keys), (N, 3), jnp.float32)) - 0.5
    val_max = val_min + jnp.abs(
        jax.random.normal(next(keys), (N, 3), jnp.float32)) + 1.0

    x = jax.random.normal(next(keys), (B, N, dims[0]), jnp.float32)

    out = gnn_unsupervised_forward(x, a_norm, params, val_min, val_max)
    out = jax.block_until_ready(out)

    ref = reference_forward(x, a_norm, params, val_min, val_max)
    # bf16 MXU operands (f32 accumulation) vs. the pure-f32 reference: the /10
    # + sigmoid output compression keeps the error well inside this tolerance.
    np.testing.assert_allclose(np.asarray(out), np.asarray(ref),
                               rtol=2e-2, atol=2e-2)
    assert out.shape == (B, N, 3)
    print("KERNEL_OK")
</pallas_src>

<mosaic_0001>
module attributes {stable_mosaic.version = 11 : i64} {
  func.func @kernel(%arg0: i32, %arg1: memref<1x16x4xf32, #tpu.memory_space<vmem>>, %arg2: memref<16x16xbf16, #tpu.memory_space<vmem>>, %arg3: memref<4x32xbf16, #tpu.memory_space<vmem>>, %arg4: memref<4x32xbf16, #tpu.memory_space<vmem>>, %arg5: memref<4x32xbf16, #tpu.memory_space<vmem>>, %arg6: memref<16x32xf32, #tpu.memory_space<vmem>>, %arg7: memref<16x32xf32, #tpu.memory_space<vmem>>, %arg8: memref<32x32xbf16, #tpu.memory_space<vmem>>, %arg9: memref<32x32xbf16, #tpu.memory_space<vmem>>, %arg10: memref<32x32xbf16, #tpu.memory_space<vmem>>, %arg11: memref<16x32xf32, #tpu.memory_space<vmem>>, %arg12: memref<16x32xf32, #tpu.memory_space<vmem>>, %arg13: memref<32x128xbf16, #tpu.memory_space<vmem>>, %arg14: memref<32x128xbf16, #tpu.memory_space<vmem>>, %arg15: memref<32x128xbf16, #tpu.memory_space<vmem>>, %arg16: memref<1x128xf32, #tpu.memory_space<vmem>>, %arg17: memref<16x128xf32, #tpu.memory_space<vmem>>, %arg18: memref<16x128xf32, #tpu.memory_space<vmem>>, %arg19: memref<1x16x128xf32, #tpu.memory_space<vmem>>) attributes {dimension_semantics = [#tpu.dimension_semantics<parallel>], iteration_bounds = array<i64: 2>, scalar_prefetch = 0 : i64, scratch_operands = 0 : i64, tpu.core_type = #tpu.core_type<tc>, window_params = [{transform_indices = @transform_0, window_bounds = array<i64: 1, 16, 4>}, {pipeline_mode = #tpu.pipeline_mode<synchronous>, transform_indices = @transform_1, window_bounds = array<i64: 16, 16>}, {pipeline_mode = #tpu.pipeline_mode<synchronous>, transform_indices = @transform_2, window_bounds = array<i64: 4, 32>}, {pipeline_mode = #tpu.pipeline_mode<synchronous>, transform_indices = @transform_3, window_bounds = array<i64: 4, 32>}, {pipeline_mode = #tpu.pipeline_mode<synchronous>, transform_indices = @transform_4, window_bounds = array<i64: 4, 32>}, {pipeline_mode = #tpu.pipeline_mode<synchronous>, transform_indices = @transform_5, window_bounds = array<i64: 16, 32>}, {pipeline_mode = #tpu.pipeline_mode<synchronous>, transform_indices = @transform_6, window_bounds = array<i64: 16, 32>}, {pipeline_mode = #tpu.pipeline_mode<synchronous>, transform_indices = @transform_7, window_bounds = array<i64: 32, 32>}, {pipeline_mode = #tpu.pipeline_mode<synchronous>, transform_indices = @transform_8, window_bounds = array<i64: 32, 32>}, {pipeline_mode = #tpu.pipeline_mode<synchronous>, transform_indices = @transform_9, window_bounds = array<i64: 32, 32>}, {pipeline_mode = #tpu.pipeline_mode<synchronous>, transform_indices = @transform_10, window_bounds = array<i64: 16, 32>}, {pipeline_mode = #tpu.pipeline_mode<synchronous>, transform_indices = @transform_11, window_bounds = array<i64: 16, 32>}, {pipeline_mode = #tpu.pipeline_mode<synchronous>, transform_indices = @transform_12, window_bounds = array<i64: 32, 128>}, {pipeline_mode = #tpu.pipeline_mode<synchronous>, transform_indices = @transform_13, window_bounds = array<i64: 32, 128>}, {pipeline_mode = #tpu.pipeline_mode<synchronous>, transform_indices = @transform_14, window_bounds = array<i64: 32, 128>}, {pipeline_mode = #tpu.pipeline_mode<synchronous>, transform_indices = @transform_15, window_bounds = array<i64: 1, 128>}, {pipeline_mode = #tpu.pipeline_mode<synchronous>, transform_indices = @transform_16, window_bounds = array<i64: 16, 128>}, {pipeline_mode = #tpu.pipeline_mode<synchronous>, transform_indices = @transform_17, window_bounds = array<i64: 16, 128>}, {transform_indices = @transform_18, window_bounds = array<i64: 1, 16, 128>}]} {
    %c0 = arith.constant 0 : index
    %c0_0 = arith.constant 0 : index
    %0 = vector.load %arg2[%c0, %c0_0] : memref<16x16xbf16, #tpu.memory_space<vmem>>, vector<16x16xbf16>
    %c0_1 = arith.constant 0 : index
    %c0_2 = arith.constant 0 : index
    %c0_3 = arith.constant 0 : index
    %1 = vector.load %arg1[%c0_1, %c0_2, %c0_3] : memref<1x16x4xf32, #tpu.memory_space<vmem>>, vector<1x16x4xf32>
    %2 = vector.shape_cast %1 : vector<1x16x4xf32> to vector<16x4xf32>
    %3 = arith.truncf %2 : vector<16x4xf32> to vector<16x4xbf16>
    %c0_4 = arith.constant 0 : index
    %c0_5 = arith.constant 0 : index
    %4 = vector.load %arg3[%c0_4, %c0_5] : memref<4x32xbf16, #tpu.memory_space<vmem>>, vector<4x32xbf16>
    %cst = arith.constant dense<0.000000e+00> : vector<16x32xf32>
    %5 = tpu.matmul %3, %4, %cst {dimension_numbers = #tpu.dot_dimension_numbers<[1], [0], [0], [1], [0, 0, 1, 1], [], []>} : vector<16x4xbf16>, vector<4x32xbf16>, vector<16x32xf32> -> vector<16x32xf32>
    %6 = arith.truncf %2 : vector<16x4xf32> to vector<16x4xbf16>
    %cst_6 = arith.constant dense<0.000000e+00> : vector<16x4xf32>
    %7 = tpu.matmul %0, %6, %cst_6 {dimension_numbers = #tpu.dot_dimension_numbers<[1], [0], [0], [1], [0, 0, 1, 1], [], []>} : vector<16x16xbf16>, vector<16x4xbf16>, vector<16x4xf32> -> vector<16x4xf32>
    %8 = arith.truncf %7 : vector<16x4xf32> to vector<16x4xbf16>
    %c0_7 = arith.constant 0 : index
    %c0_8 = arith.constant 0 : index
    %9 = vector.load %arg4[%c0_7, %c0_8] : memref<4x32xbf16, #tpu.memory_space<vmem>>, vector<4x32xbf16>
    %cst_9 = arith.constant dense<0.000000e+00> : vector<16x32xf32>
    %10 = tpu.matmul %8, %9, %cst_9 {dimension_numbers = #tpu.dot_dimension_numbers<[1], [0], [0], [1], [0, 0, 1, 1], [], []>} : vector<16x4xbf16>, vector<4x32xbf16>, vector<16x32xf32> -> vector<16x32xf32>
    %11 = arith.addf %5, %10 : vector<16x32xf32>
    %12 = arith.truncf %7 : vector<16x4xf32> to vector<16x4xbf16>
    %cst_10 = arith.constant dense<0.000000e+00> : vector<16x4xf32>
    %13 = tpu.matmul %0, %12, %cst_10 {dimension_numbers = #tpu.dot_dimension_numbers<[1], [0], [0], [1], [0, 0, 1, 1], [], []>} : vector<16x16xbf16>, vector<16x4xbf16>, vector<16x4xf32> -> vector<16x4xf32>
    %14 = arith.truncf %13 : vector<16x4xf32> to vector<16x4xbf16>
    %c0_11 = arith.constant 0 : index
    %c0_12 = arith.constant 0 : index
    %15 = vector.load %arg5[%c0_11, %c0_12] : memref<4x32xbf16, #tpu.memory_space<vmem>>, vector<4x32xbf16>
    %cst_13 = arith.constant dense<0.000000e+00> : vector<16x32xf32>
    %16 = tpu.matmul %14, %15, %cst_13 {dimension_numbers = #tpu.dot_dimension_numbers<[1], [0], [0], [1], [0, 0, 1, 1], [], []>} : vector<16x4xbf16>, vector<4x32xbf16>, vector<16x32xf32> -> vector<16x32xf32>
    %17 = arith.addf %11, %16 : vector<16x32xf32>
    %c0_14 = arith.constant 0 : index
    %c0_15 = arith.constant 0 : index
    %18 = vector.load %arg6[%c0_14, %c0_15] : memref<16x32xf32, #tpu.memory_space<vmem>>, vector<16x32xf32>
    %19 = arith.mulf %17, %18 : vector<16x32xf32>
    %c0_16 = arith.constant 0 : index
    %c0_17 = arith.constant 0 : index
    %20 = vector.load %arg7[%c0_16, %c0_17] : memref<16x32xf32, #tpu.memory_space<vmem>>, vector<16x32xf32>
    %21 = arith.addf %19, %20 : vector<16x32xf32>
    %cst_18 = arith.constant 0.000000e+00 : f32
    %22 = vector.broadcast %cst_18 : f32 to vector<16x32xf32>
    %23 = arith.cmpf oge, %21, %22 : vector<16x32xf32>
    %cst_19 = arith.constant 0.00999999977 : f32
    %24 = vector.broadcast %cst_19 : f32 to vector<16x32xf32>
    %25 = arith.mulf %24, %21 : vector<16x32xf32>
    %26 = arith.select %23, %21, %25 : vector<16x32xi1>, vector<16x32xf32>
    %27 = arith.truncf %26 : vector<16x32xf32> to vector<16x32xbf16>
    %c0_20 = arith.constant 0 : index
    %c0_21 = arith.constant 0 : index
    %28 = vector.load %arg8[%c0_20, %c0_21] : memref<32x32xbf16, #tpu.memory_space<vmem>>, vector<32x32xbf16>
    %cst_22 = arith.constant dense<0.000000e+00> : vector<16x32xf32>
    %29 = tpu.matmul %27, %28, %cst_22 {dimension_numbers = #tpu.dot_dimension_numbers<[1], [0], [0], [1], [0, 0, 1, 1], [], []>} : vector<16x32xbf16>, vector<32x32xbf16>, vector<16x32xf32> -> vector<16x32xf32>
    %30 = arith.truncf %26 : vector<16x32xf32> to vector<16x32xbf16>
    %cst_23 = arith.constant dense<0.000000e+00> : vector<16x32xf32>
    %31 = tpu.matmul %0, %30, %cst_23 {dimension_numbers = #tpu.dot_dimension_numbers<[1], [0], [0], [1], [0, 0, 1, 1], [], []>} : vector<16x16xbf16>, vector<16x32xbf16>, vector<16x32xf32> -> vector<16x32xf32>
    %32 = arith.truncf %31 : vector<16x32xf32> to vector<16x32xbf16>
    %c0_24 = arith.constant 0 : index
    %c0_25 = arith.constant 0 : index
    %33 = vector.load %arg9[%c0_24, %c0_25] : memref<32x32xbf16, #tpu.memory_space<vmem>>, vector<32x32xbf16>
    %cst_26 = arith.constant dense<0.000000e+00> : vector<16x32xf32>
    %34 = tpu.matmul %32, %33, %cst_26 {dimension_numbers = #tpu.dot_dimension_numbers<[1], [0], [0], [1], [0, 0, 1, 1], [], []>} : vector<16x32xbf16>, vector<32x32xbf16>, vector<16x32xf32> -> vector<16x32xf32>
    %35 = arith.addf %29, %34 : vector<16x32xf32>
    %36 = arith.truncf %31 : vector<16x32xf32> to vector<16x32xbf16>
    %cst_27 = arith.constant dense<0.000000e+00> : vector<16x32xf32>
    %37 = tpu.matmul %0, %36, %cst_27 {dimension_numbers = #tpu.dot_dimension_numbers<[1], [0], [0], [1], [0, 0, 1, 1], [], []>} : vector<16x16xbf16>, vector<16x32xbf16>, vector<16x32xf32> -> vector<16x32xf32>
    %38 = arith.truncf %37 : vector<16x32xf32> to vector<16x32xbf16>
    %c0_28 = arith.constant 0 : index
    %c0_29 = arith.constant 0 : index
    %39 = vector.load %arg10[%c0_28, %c0_29] : memref<32x32xbf16, #tpu.memory_space<vmem>>, vector<32x32xbf16>
    %cst_30 = arith.constant dense<0.000000e+00> : vector<16x32xf32>
    %40 = tpu.matmul %38, %39, %cst_30 {dimension_numbers = #tpu.dot_dimension_numbers<[1], [0], [0], [1], [0, 0, 1, 1], [], []>} : vector<16x32xbf16>, vector<32x32xbf16>, vector<16x32xf32> -> vector<16x32xf32>
    %41 = arith.addf %35, %40 : vector<16x32xf32>
    %c0_31 = arith.constant 0 : index
    %c0_32 = arith.constant 0 : index
    %42 = vector.load %arg11[%c0_31, %c0_32] : memref<16x32xf32, #tpu.memory_space<vmem>>, vector<16x32xf32>
    %43 = arith.mulf %41, %42 : vector<16x32xf32>
    %c0_33 = arith.constant 0 : index
    %c0_34 = arith.constant 0 : index
    %44 = vector.load %arg12[%c0_33, %c0_34] : memref<16x32xf32, #tpu.memory_space<vmem>>, vector<16x32xf32>
    %45 = arith.addf %43, %44 : vector<16x32xf32>
    %cst_35 = arith.constant 0.000000e+00 : f32
    %46 = vector.broadcast %cst_35 : f32 to vector<16x32xf32>
    %47 = arith.cmpf oge, %45, %46 : vector<16x32xf32>
    %cst_36 = arith.constant 0.00999999977 : f32
    %48 = vector.broadcast %cst_36 : f32 to vector<16x32xf32>
    %49 = arith.mulf %48, %45 : vector<16x32xf32>
    %50 = arith.select %47, %45, %49 : vector<16x32xi1>, vector<16x32xf32>
    %51 = arith.truncf %50 : vector<16x32xf32> to vector<16x32xbf16>
    %c0_37 = arith.constant 0 : index
    %c0_38 = arith.constant 0 : index
    %52 = vector.load %arg13[%c0_37, %c0_38] : memref<32x128xbf16, #tpu.memory_space<vmem>>, vector<32x128xbf16>
    %cst_39 = arith.constant dense<0.000000e+00> : vector<16x128xf32>
    %53 = tpu.matmul %51, %52, %cst_39 {dimension_numbers = #tpu.dot_dimension_numbers<[1], [0], [0], [1], [0, 0, 1, 1], [], []>} : vector<16x32xbf16>, vector<32x128xbf16>, vector<16x128xf32> -> vector<16x128xf32>
    %54 = arith.truncf %50 : vector<16x32xf32> to vector<16x32xbf16>
    %cst_40 = arith.constant dense<0.000000e+00> : vector<16x32xf32>
    %55 = tpu.matmul %0, %54, %cst_40 {dimension_numbers = #tpu.dot_dimension_numbers<[1], [0], [0], [1], [0, 0, 1, 1], [], []>} : vector<16x16xbf16>, vector<16x32xbf16>, vector<16x32xf32> -> vector<16x32xf32>
    %56 = arith.truncf %55 : vector<16x32xf32> to vector<16x32xbf16>
    %c0_41 = arith.constant 0 : index
    %c0_42 = arith.constant 0 : index
    %57 = vector.load %arg14[%c0_41, %c0_42] : memref<32x128xbf16, #tpu.memory_space<vmem>>, vector<32x128xbf16>
    %cst_43 = arith.constant dense<0.000000e+00> : vector<16x128xf32>
    %58 = tpu.matmul %56, %57, %cst_43 {dimension_numbers = #tpu.dot_dimension_numbers<[1], [0], [0], [1], [0, 0, 1, 1], [], []>} : vector<16x32xbf16>, vector<32x128xbf16>, vector<16x128xf32> -> vector<16x128xf32>
    %59 = arith.addf %53, %58 : vector<16x128xf32>
    %60 = arith.truncf %55 : vector<16x32xf32> to vector<16x32xbf16>
    %cst_44 = arith.constant dense<0.000000e+00> : vector<16x32xf32>
    %61 = tpu.matmul %0, %60, %cst_44 {dimension_numbers = #tpu.dot_dimension_numbers<[1], [0], [0], [1], [0, 0, 1, 1], [], []>} : vector<16x16xbf16>, vector<16x32xbf16>, vector<16x32xf32> -> vector<16x32xf32>
    %62 = arith.truncf %61 : vector<16x32xf32> to vector<16x32xbf16>
    %c0_45 = arith.constant 0 : index
    %c0_46 = arith.constant 0 : index
    %63 = vector.load %arg15[%c0_45, %c0_46] : memref<32x128xbf16, #tpu.memory_space<vmem>>, vector<32x128xbf16>
    %cst_47 = arith.constant dense<0.000000e+00> : vector<16x128xf32>
    %64 = tpu.matmul %62, %63, %cst_47 {dimension_numbers = #tpu.dot_dimension_numbers<[1], [0], [0], [1], [0, 0, 1, 1], [], []>} : vector<16x32xbf16>, vector<32x128xbf16>, vector<16x128xf32> -> vector<16x128xf32>
    %65 = arith.addf %59, %64 : vector<16x128xf32>
    %c0_48 = arith.constant 0 : index
    %c0_49 = arith.constant 0 : index
    %66 = vector.load %arg16[%c0_48, %c0_49] : memref<1x128xf32, #tpu.memory_space<vmem>>, vector<1x128xf32>
    %67 = vector.broadcast %66 : vector<1x128xf32> to vector<16x128xf32>
    %68 = arith.addf %65, %67 : vector<16x128xf32>
    %c0_50 = arith.constant 0 : index
    %c0_51 = arith.constant 0 : index
    %69 = vector.load %arg17[%c0_50, %c0_51] : memref<16x128xf32, #tpu.memory_space<vmem>>, vector<16x128xf32>
    %c0_52 = arith.constant 0 : index
    %c0_53 = arith.constant 0 : index
    %70 = vector.load %arg18[%c0_52, %c0_53] : memref<16x128xf32, #tpu.memory_space<vmem>>, vector<16x128xf32>
    %71 = arith.subf %70, %69 : vector<16x128xf32>
    %72 = arith.negf %68 : vector<16x128xf32>
    %73 = math.exp %72 : vector<16x128xf32>
    %cst_54 = arith.constant 1.000000e+00 : f32
    %74 = vector.broadcast %cst_54 : f32 to vector<16x128xf32>
    %75 = arith.addf %74, %73 : vector<16x128xf32>
    %76 = arith.divf %74, %75 : vector<16x128xf32>
    %77 = arith.mulf %71, %76 : vector<16x128xf32>
    %78 = arith.addf %69, %77 : vector<16x128xf32>
    %c0_55 = arith.constant 0 : index
    %c0_56 = arith.constant 0 : index
    %c0_57 = arith.constant 0 : index
    %79 = vector.load %arg19[%c0_55, %c0_56, %c0_57] : memref<1x16x128xf32, #tpu.memory_space<vmem>>, vector<1x16x128xf32>
    %80 = vector.shape_cast %79 : vector<1x16x128xf32> to vector<16x128xf32>
    %81 = vector.shape_cast %78 : vector<16x128xf32> to vector<1x16x128xf32>
    tpu.vector_store %arg19[%c0_55, %c0_56, %c0_57], %81 {strides = array<i32>} : memref<1x16x128xf32, #tpu.memory_space<vmem>>, vector<1x16x128xf32>,
    return
  }
  func.func @transform_0(%arg0: i32) -> (i32, i32, i32) {
    %c0_i32 = arith.constant 0 : i32
    %c0_i32_0 = arith.constant 0 : i32
    %c0_i32_1 = arith.constant 0 : i32
    return %arg0, %c0_i32, %c0_i32_0 : i32, i32, i32
  }
  func.func @transform_1(%arg0: i32) -> (i32, i32) {
    %c0_i32 = arith.constant 0 : i32
    %c0_i32_0 = arith.constant 0 : i32
    %c0_i32_1 = arith.constant 0 : i32
    return %c0_i32, %c0_i32_0 : i32, i32
  }
  func.func @transform_2(%arg0: i32) -> (i32, i32) {
    %c0_i32 = arith.constant 0 : i32
    %c0_i32_0 = arith.constant 0 : i32
    %c0_i32_1 = arith.constant 0 : i32
    return %c0_i32, %c0_i32_0 : i32, i32
  }
  func.func @transform_3(%arg0: i32) -> (i32, i32) {
    %c0_i32 = arith.constant 0 : i32
    %c0_i32_0 = arith.constant 0 : i32
    %c0_i32_1 = arith.constant 0 : i32
    return %c0_i32, %c0_i32_0 : i32, i32
  }
  func.func @transform_4(%arg0: i32) -> (i32, i32) {
    %c0_i32 = arith.constant 0 : i32
    %c0_i32_0 = arith.constant 0 : i32
    %c0_i32_1 = arith.constant 0 : i32
    return %c0_i32, %c0_i32_0 : i32, i32
  }
  func.func @transform_5(%arg0: i32) -> (i32, i32) {
    %c0_i32 = arith.constant 0 : i32
    %c0_i32_0 = arith.constant 0 : i32
    %c0_i32_1 = arith.constant 0 : i32
    return %c0_i32, %c0_i32_0 : i32, i32
  }
  func.func @transform_6(%arg0: i32) -> (i32, i32) {
    %c0_i32 = arith.constant 0 : i32
    %c0_i32_0 = arith.constant 0 : i32
    %c0_i32_1 = arith.constant 0 : i32
    return %c0_i32, %c0_i32_0 : i32, i32
  }
  func.func @transform_7(%arg0: i32) -> (i32, i32) {
    %c0_i32 = arith.constant 0 : i32
    %c0_i32_0 = arith.constant 0 : i32
    %c0_i32_1 = arith.constant 0 : i32
    return %c0_i32, %c0_i32_0 : i32, i32
  }
  func.func @transform_8(%arg0: i32) -> (i32, i32) {
    %c0_i32 = arith.constant 0 : i32
    %c0_i32_0 = arith.constant 0 : i32
    %c0_i32_1 = arith.constant 0 : i32
    return %c0_i32, %c0_i32_0 : i32, i32
  }
  func.func @transform_9(%arg0: i32) -> (i32, i32) {
    %c0_i32 = arith.constant 0 : i32
    %c0_i32_0 = arith.constant 0 : i32
    %c0_i32_1 = arith.constant 0 : i32
    return %c0_i32, %c0_i32_0 : i32, i32
  }
  func.func @transform_10(%arg0: i32) -> (i32, i32) {
    %c0_i32 = arith.constant 0 : i32
    %c0_i32_0 = arith.constant 0 : i32
    %c0_i32_1 = arith.constant 0 : i32
    return %c0_i32, %c0_i32_0 : i32, i32
  }
  func.func @transform_11(%arg0: i32) -> (i32, i32) {
    %c0_i32 = arith.constant 0 : i32
    %c0_i32_0 = arith.constant 0 : i32
    %c0_i32_1 = arith.constant 0 : i32
    return %c0_i32, %c0_i32_0 : i32, i32
  }
  func.func @transform_12(%arg0: i32) -> (i32, i32) {
    %c0_i32 = arith.constant 0 : i32
    %c0_i32_0 = arith.constant 0 : i32
    %c0_i32_1 = arith.constant 0 : i32
    return %c0_i32, %c0_i32_0 : i32, i32
  }
  func.func @transform_13(%arg0: i32) -> (i32, i32) {
    %c0_i32 = arith.constant 0 : i32
    %c0_i32_0 = arith.constant 0 : i32
    %c0_i32_1 = arith.constant 0 : i32
    return %c0_i32, %c0_i32_0 : i32, i32
  }
  func.func @transform_14(%arg0: i32) -> (i32, i32) {
    %c0_i32 = arith.constant 0 : i32
    %c0_i32_0 = arith.constant 0 : i32
    %c0_i32_1 = arith.constant 0 : i32
    return %c0_i32, %c0_i32_0 : i32, i32
  }
  func.func @transform_15(%arg0: i32) -> (i32, i32) {
    %c0_i32 = arith.constant 0 : i32
    %c0_i32_0 = arith.constant 0 : i32
    %c0_i32_1 = arith.constant 0 : i32
    return %c0_i32, %c0_i32_0 : i32, i32
  }
  func.func @transform_16(%arg0: i32) -> (i32, i32) {
    %c0_i32 = arith.constant 0 : i32
    %c0_i32_0 = arith.constant 0 : i32
    %c0_i32_1 = arith.constant 0 : i32
    return %c0_i32, %c0_i32_0 : i32, i32
  }
  func.func @transform_17(%arg0: i32) -> (i32, i32) {
    %c0_i32 = arith.constant 0 : i32
    %c0_i32_0 = arith.constant 0 : i32
    %c0_i32_1 = arith.constant 0 : i32
    return %c0_i32, %c0_i32_0 : i32, i32
  }
  func.func @transform_18(%arg0: i32) -> (i32, i32, i32) {
    %c0_i32 = arith.constant 0 : i32
    %c0_i32_0 = arith.constant 0 : i32
    %c0_i32_1 = arith.constant 0 : i32
    return %arg0, %c0_i32, %c0_i32_0 : i32, i32, i32
  }
}

</mosaic_0001>

<bundles_post_ra>
// kernel: tpu_custom_call.1
= control target key start
LH: loop header
LB: loop body
LE: loop exit
PB: predicated region body
PF: predicated region fallthrough
CT: control target
= control target key end

     0   :  { %s3157_s0 = inlined_call_operand.vmem [shape: f32[2,16,4], index: 0, kind: input, shape index: {}]   ;;  %s3158_s1 = inlined_call_operand.hbm [shape: bf16[16,16], index: 1, kind: input, shape index: {}]   ;;  %s3159_s2 = inlined_call_operand.hbm [shape: bf16[4,32], index: 2, kind: input, shape index: {}]   ;;  %s3160_s3 = inlined_call_operand.hbm [shape: bf16[4,32], index: 3, kind: input, shape index: {}]   ;;  %s3161_s4 = inlined_call_operand.hbm [shape: bf16[4,32], index: 4, kind: input, shape index: {}]   ;;  %s3162_s5 = inlined_call_operand.vmem [shape: f32[16,32], index: 5, kind: input, shape index: {}]   ;;  %s3163_s6 = inlined_call_operand.vmem [shape: f32[16,32], index: 6, kind: input, shape index: {}]   ;;  %s3164_s7 = inlined_call_operand.vmem [shape: bf16[32,32], index: 7, kind: input, shape index: {}]   ;;  %s3165_s8 = inlined_call_operand.vmem [shape: bf16[32,32], index: 8, kind: input, shape index: {}]   ;;  %s3166_s9 = inlined_call_operand.hbm [shape: bf16[32,32], index: 9, kind: input, shape index: {}]   ;;  %s3167_s10 = inlined_call_operand.hbm [shape: f32[16,32], index: 10, kind: input, shape index: {}]   ;;  %s3168_s11 = inlined_call_operand.vmem [shape: f32[16,32], index: 11, kind: input, shape index: {}]   ;;  %s3169_s12 = inlined_call_operand.hbm [shape: bf16[32,128], index: 12, kind: input, shape index: {}]   ;;  %s3170_s13 = inlined_call_operand.hbm [shape: bf16[32,128], index: 13, kind: input, shape index: {}]   ;;  %s3171_s14 = inlined_call_operand.hbm [shape: bf16[32,128], index: 14, kind: input, shape index: {}]   ;;  %s3172_s15 = inlined_call_operand.hbm [shape: f32[1,128], index: 15, kind: input, shape index: {}]   ;;  %s3173_s16 = inlined_call_operand.vmem [shape: f32[16,128], index: 16, kind: input, shape index: {}]   ;;  %s3174_s17 = inlined_call_operand.hbm [shape: f32[16,128], index: 17, kind: input, shape index: {}]   ;;  %s3175_s18 = inlined_call_operand.hbm [shape: f32[2,16,128], index: 18, kind: output, shape index: {}]  }
   0x1   :  { %3197 = sst [smem:[#allocation36_spill]] %s3157_s0 }
   0x2   :  { %3198 = sst [smem:[#allocation37_spill]] %s3158_s1 }
   0x3   :  { %3199 = sst [smem:[#allocation38_spill]] %s3159_s2 }
   0x4   :  { %3200 = sst [smem:[#allocation39_spill]] %s3161_s4 }
   0x5   :  { %3201 = sst [smem:[#allocation40_spill]] %s3164_s7 }
   0x6   :  { %3202 = sst [smem:[#allocation41_spill]] %s3168_s11 }
   0x7   :  { %3203 = sst [smem:[#allocation42_spill]] %s3173_s16 }
   0x8   :  { %3204 = sst [smem:[#allocation43_spill]] %s3175_s18 }
   0x9   :  { %23 = vsyncpa [#allocation3], 0 }
   0xa   :  { %24 = vsyncpa [#allocation6], 0 }
   0xb   :  { %25 = vsyncpa [#allocation9], 0 }
   0xc   :  { %26 = vsyncpa [#allocation12], 0 }
   0xd   :  { %27 = vsyncpa [#allocation15], 0 }
   0xe   :  { %28 = vsyncpa [#allocation18], 0 }
   0xf   :  { %29 = vsyncpa [#allocation4], 0 }
  0x10   :  { %31 = vsyncpa [#allocation4 + $0x1], 0  ;;  %s2663_s27 = smov 0   ;;  %s2665_s28 = smov 0  }
  0x11   :  { %s2667_s29 = smov 0   ;;  %s2669_s30 = smov 0  }
  0x12 LB: > { %3205 = sst [smem:[#allocation28_spill]] %s2534_s27  ;;  %s2684_s0 = sadd.s32 4294967295, %s2546_s30   ;;  %s2546_s30 = sphi %s2669_s30, %s3248_s30   ;;  %s2542_s29 = sphi %s2667_s29, %s3251_s29   ;;  %s2538_s28 = sphi %s2665_s28, %s3250_s28   ;;  %s2534_s27 = sphi %s2663_s27, %s3249_s27  }
  0x13   : > { %3206 = sst [smem:[#allocation29_spill]] %s2538_s28  ;;  %s1752_s19 = sadd.s32 4294967294, %s2546_s30  }
  0x14   : > { %3207 = sst [smem:[#allocation30_spill]] %s2542_s29  ;;  %s2688_s1 = sadd.s32 1, %s2546_s30  }
  0x15   : > { %3208 = sst [smem:[#allocation31_spill]] %s2546_s30  ;;  %s427_s20 = sadd.s32 1, %s2542_s29 }
  0x16   : > { %3209 = sst [smem:[#allocation32_spill]] %s2688_s1  ;;  %s424_s21 = ssub.s32 %s2546_s30, %s2688_s1 }
  0x17   : > { %p437_p0 = scmp.ne.s32.totalorder %s2542_s29, %s2538_s28  ;;  %p425_p1 = scmp.eq.s32.totalorder %s424_s21, 0 }
  0x18   : > { %p438_p2 = scmp.eq.s32.totalorder %s2684_s0, 1  ;;  %p443_p3 = scmp.ne.s32.totalorder %s2538_s28, %s2534_s27 }
  0x19   : > { %p444_p4 = scmp.eq.s32.totalorder %s1752_s19, 1  ;;  %p1753_p7 = scmp.ge.s32.totalorder %s2546_s30, 1 }
  0x1a   : > { %s2699_s22 = scalar_select %p425_p1, %s2542_s29, %s427_s20  }
  0x1b   : > { %p2701_p5 = por %p438_p2, %p437_p0  ;;  %p2705_p6 = por %p444_p4, %p443_p3 }
  0x1c   : > { %3210 = sst [smem:[#allocation33_spill]] %s2699_s22  ;;  %p451_p8 = scmp.lt.s32.totalorder %s2546_s30, 3 }
  0x1d   : > { %s3211_s2 = scalar_select %p2701_p5, 1, 0 }
  0x1e   : > { %s3213_s23 = scalar_select %p2705_p6, 1, 0 }
  0x1f   : > { %3212 = sst [smem:[#allocation34_spill]] %s3211_s2  ;;  %p3187_p9 = scmp.eq.s32.totalorder %s2684_s0, 0 }
  0x20   : > { %3214 = sst [smem:[#allocation35_spill]] %s3213_s23  ;;  %p2712_p10 = pnand %p1753_p7, %p451_p8 }
  0x21   : > { %s2548_s25 = smov [#allocation5]   ;;  %s2549_s19 = smov [#allocation8]  }
  0x22   : > { %s3215_s24 = scalar_select %p2712_p10, 1, 0 }
  0x23   : > { %s477_s26 = sshll.u32 %s2548_s25, 4  ;;  %p2019_p11 = pneg %p2712_p10  ;;  %s478_s26 = int_to_ptr.vmem [resolvable:$true] %s477_s26 }
  0x24   : > { %s499_s20 = sshll.u32 %s2549_s19, 4  ;;  %s2550_s22 = smov [#allocation11]   ;;  %s2724_s20 = int_to_ptr.vmem [resolvable:$true] %s499_s20 }
  0x25   : > { %p2720_p12 = pnand %p3187_p9, %p2019_p11  ;;  %s534_s29 = sshll.u32 %s2550_s22, 4  ;;  %s2726_s29 = int_to_ptr.vmem [resolvable:$true] %s534_s29 }
  0x26   : > { %s3217_s25 = sld [smem:[#allocation38_spill]] }
  0x27   : > { %p2736_p0 = pneg %p2720_p12 }
  0x2c   : > { %s2152_s27 = scalar_lea.hbm %s3217_s25, 32 }
  0x2d   : > { %p2153_p13 = scmp.ne.s32.totalorder %s3217_s25, %s2152_s27  ;;  %p2159_p3 = scmp.lt.u32.totalorder %s2152_s27, %s3217_s25 }
  0x2f   : > { %p2155_p1 = pnand %p2736_p0, %p2153_p13 }
  0x31   : > { %p2156_p2 = pneg %p2155_p1 }
  0x33   : > { %p2161_p4 = pnand %p2159_p3, %p2156_p2 }
  0x35   : > { %2164 = shalt.err (!%p2161_p4)
}
  0x36   : > { %s2165_s1 = scalar_lea.vmem %s478_s26, 32  ;;  %p2173_p9 = scmp.lt.s32.totalorder %s478_s26, %s478_s26 }
  0x37   : > { %p2166_p7 = scmp.ne.s32.totalorder %s478_s26, %s2165_s1  ;;  %p2174_p6 = scmp.lt.s32.totalorder %s2165_s1, %s2165_s1 }
  0x39   : > { %p2168_p8 = pnand %p2166_p7, %p2736_p0  ;;  %p2175_p5 = por %p2174_p6, %p2173_p9 }
  0x3b   : > { %p2169_p11 = pneg %p2168_p8 }
  0x3d   : > { %p2176_p10 = pnand %p2175_p5, %p2169_p11 }
  0x3f   : > { %2179 = shalt.err (!%p2176_p10)
}
  0x40   : > { %2025 = dma.hbm_to_vmem [thread:$0]  (!%p2720_p12), %s3217_s25, 32, %s478_s26, [#allocation6]  }
  0x41   : > { %s3219_s4 = sld [smem:[#allocation39_spill]] }
  0x47   : > { %s2180_s23 = scalar_lea.hbm %s3219_s4, 32 }
  0x48   : > { %p2181_p13 = scmp.ne.s32.totalorder %s3219_s4, %s2180_s23  ;;  %p2187_p5 = scmp.lt.u32.totalorder %s2180_s23, %s3219_s4 }
  0x4a   : > { %p2183_p1 = pnand %p2181_p13, %p2736_p0 }
  0x4c   : > { %p2184_p6 = pneg %p2183_p1 }
  0x4e   : > { %p2189_p9 = pnand %p2187_p5, %p2184_p6 }
  0x50   : > { %2192 = shalt.err (!%p2189_p9)
}
  0x51   : > { %s2193_s26 = scalar_lea.vmem %s2724_s20, 32  ;;  %p2201_p4 = scmp.lt.s32.totalorder %s2724_s20, %s2724_s20 }
  0x52   : > { %p2194_p10 = scmp.ne.s32.totalorder %s2724_s20, %s2193_s26  ;;  %p2202_p7 = scmp.lt.s32.totalorder %s2193_s26, %s2193_s26 }
  0x54   : > { %p2196_p2 = pnand %p2194_p10, %p2736_p0  ;;  %p2203_p8 = por %p2202_p7, %p2201_p4 }
  0x56   : > { %p2197_p3 = pneg %p2196_p2 }
  0x58   : > { %p2204_p11 = pnand %p2203_p8, %p2197_p3 }
  0x5a   : > { %2207 = shalt.err (!%p2204_p11)
}
  0x5b   : > { %2031 = dma.hbm_to_vmem [thread:$0]  (!%p2720_p12), %s3219_s4, 32, %s2724_s20, [#allocation9]  }
  0x5c   : > { %s2208_s27 = scalar_lea.hbm %s3167_s10, 256 }
  0x5d   : > { %p2209_p13 = scmp.ne.s32.totalorder %s3167_s10, %s2208_s27  ;;  %p2215_p5 = scmp.lt.u32.totalorder %s2208_s27, %s3167_s10 }
  0x5f   : > { %p2211_p1 = pnand %p2209_p13, %p2736_p0 }
  0x61   : > { %p2212_p6 = pneg %p2211_p1 }
  0x63   : > { %p2217_p9 = pnand %p2215_p5, %p2212_p6 }
  0x65   : > { %2220 = shalt.err (!%p2217_p9)
}
  0x66   : > { %s2221_s20 = scalar_lea.vmem %s2726_s29, 256  ;;  %p2229_p4 = scmp.lt.s32.totalorder %s2726_s29, %s2726_s29 }
  0x67   : > { %p2222_p10 = scmp.ne.s32.totalorder %s2726_s29, %s2221_s20  ;;  %p2230_p7 = scmp.lt.s32.totalorder %s2221_s20, %s2221_s20 }
  0x69   : > { %p2224_p2 = pnand %p2222_p10, %p2736_p0  ;;  %p2231_p8 = por %p2230_p7, %p2229_p4 }
  0x6b   : > { %p2225_p3 = pneg %p2224_p2 }
  0x6d   : > { %p2232_p11 = pnand %p2231_p8, %p2225_p3 }
  0x6f   : > { %2235 = shalt.err (!%p2232_p11)
}
  0x70   : > { %s3195_s26 = smov 128   ;;  %s3196_s16 = smov 8  }
  0x71   : > { %2037 = dma.hbm_to_vmem [thread:$0]  (!%p2720_p12), %s3167_s10, 256, %s2726_s29, [#allocation12], %s3195_s26, %s3195_s26, %s3196_s16  }
  0x72   : > { %s2553_s30 = smov [#allocation14]   ;;  %s2554_s2 = smov [#allocation17]  }
  0x73   : > { %s563_s27 = sshll.u32 %s2553_s30, 4  ;;  %s590_s23 = sshll.u32 %s2554_s2, 4  ;;  %s564_s27 = int_to_ptr.vmem [resolvable:$true] %s563_s27  ;;  %s591_s23 = int_to_ptr.vmem [resolvable:$true] %s590_s23 }
  0x74   : > { %s2236_s20 = scalar_lea.hbm %s3170_s13, 256 }
  0x75   : > { %p2237_p13 = scmp.ne.s32.totalorder %s3170_s13, %s2236_s20  ;;  %p2243_p5 = scmp.lt.u32.totalorder %s2236_s20, %s3170_s13 }
  0x77   : > { %p2239_p1 = pnand %p2237_p13, %p2736_p0 }
  0x79   : > { %p2240_p6 = pneg %p2239_p1 }
  0x7b   : > { %p2245_p9 = pnand %p2243_p5, %p2240_p6 }
  0x7d   : > { %2248 = shalt.err (!%p2245_p9)
}
  0x7e   : > { %s2249_s29 = scalar_lea.vmem %s564_s27, 256  ;;  %p2257_p4 = scmp.lt.s32.totalorder %s564_s27, %s564_s27 }
  0x7f   : > { %p2250_p10 = scmp.ne.s32.totalorder %s564_s27, %s2249_s29  ;;  %p2258_p7 = scmp.lt.s32.totalorder %s2249_s29, %s2249_s29 }
  0x81   : > { %p2252_p2 = pnand %p2250_p10, %p2736_p0  ;;  %p2259_p8 = por %p2258_p7, %p2257_p4 }
  0x83   : > { %p2253_p3 = pneg %p2252_p2 }
  0x85   : > { %p2260_p11 = pnand %p2259_p8, %p2253_p3 }
  0x87   : > { %2263 = shalt.err (!%p2260_p11)
}
  0x88   : > { %s2555_s4 = smov 64   ;;  %s2556_s25 = smov 4  }
  0x89   : > { %2043 = dma.hbm_to_vmem [thread:$0]  (!%p2720_p12), %s3170_s13, 256, %s564_s27, [#allocation15], %s2555_s4, %s2555_s4, %s2556_s25  }
  0x8a   : > { %s2264_s30 = scalar_lea.hbm %s3172_s15, 16 }
  0x8b   : > { %p2265_p13 = scmp.ne.s32.totalorder %s3172_s15, %s2264_s30  ;;  %p2271_p5 = scmp.lt.u32.totalorder %s2264_s30, %s3172_s15 }
  0x8d   : > { %p2267_p1 = pnand %p2265_p13, %p2736_p0 }
  0x8f   : > { %p2268_p6 = pneg %p2267_p1 }
  0x91   : > { %p2273_p9 = pnand %p2271_p5, %p2268_p6 }
  0x93   : > { %2276 = shalt.err (!%p2273_p9)
}
  0x94   : > { %s2277_s29 = scalar_lea.vmem %s591_s23, 16  ;;  %s2284_s27 = scalar_lea.vmem %s591_s23, 32 }
  0x95   : > { %p2278_p10 = scmp.ne.s32.totalorder %s591_s23, %s2277_s29  ;;  %p2285_p4 = scmp.lt.s32.totalorder %s591_s23, %s591_s23 }
  0x96   : > { %p2286_p7 = scmp.lt.s32.totalorder %s2284_s27, %s2277_s29 }
  0x97   : > { %p2280_p2 = pnand %p2278_p10, %p2736_p0 }
  0x98   : > { %p2287_p8 = por %p2286_p7, %p2285_p4 }
  0x99   : > { %p2281_p3 = pneg %p2280_p2 }
  0x9b   : > { %p2288_p11 = pnand %p2287_p8, %p2281_p3 }
  0x9d   : > { %2291 = shalt.err (!%p2288_p11)
}
  0x9e   : > { %2049 = dma.hbm_to_vmem [thread:$0]  (!%p2720_p12), %s3172_s15, 16, %s591_s23, [#allocation18]  }
  0x9f   : > { %s2557_s28 = smov [#allocation2]   ;;  %s2558_s30 = smov [#allocation7]  }
  0xa0   : > { %s463_s18 = sshll.u32 %s2557_s28, 4  ;;  %s488_s2 = sshll.u32 %s2558_s30, 4  ;;  %s464_s18 = int_to_ptr.vmem [resolvable:$true] %s463_s18  ;;  %s489_s2 = int_to_ptr.vmem [resolvable:$true] %s488_s2 }
  0xa1   : > { %s3220_s20 = sld [smem:[#allocation37_spill]] }
  0xa7   : > { %s2292_s26 = scalar_lea.hbm %s3220_s20, 128 }
  0xa8   : > { %p2293_p13 = scmp.ne.s32.totalorder %s3220_s20, %s2292_s26  ;;  %p2299_p5 = scmp.lt.u32.totalorder %s2292_s26, %s3220_s20 }
  0xaa   : > { %p2295_p1 = pnand %p2293_p13, %p2736_p0 }
  0xac   : > { %p2296_p6 = pneg %p2295_p1 }
  0xae   : > { %p2301_p9 = pnand %p2299_p5, %p2296_p6 }
  0xb0   : > { %2304 = shalt.err (!%p2301_p9)
}
  0xb1   : > { %s2305_s23 = scalar_lea.vmem %s464_s18, 128  ;;  %p2313_p4 = scmp.lt.s32.totalorder %s464_s18, %s464_s18 }
  0xb2   : > { %p2306_p10 = scmp.ne.s32.totalorder %s464_s18, %s2305_s23  ;;  %p2314_p7 = scmp.lt.s32.totalorder %s2305_s23, %s2305_s23 }
  0xb4   : > { %p2308_p2 = pnand %p2306_p10, %p2736_p0  ;;  %p2315_p8 = por %p2314_p7, %p2313_p4 }
  0xb6   : > { %p2309_p3 = pneg %p2308_p2 }
  0xb8   : > { %p2316_p11 = pnand %p2315_p8, %p2309_p3 }
  0xba   : > { %2319 = shalt.err (!%p2316_p11)
}
  0xbb   : > { %2022 = dma.hbm_to_vmem [thread:$0]  (!%p2720_p12), %s3220_s20, 128, %s464_s18, [#allocation3], %s2555_s4, %s2555_s4, %s2556_s25  }
  0xbc   : > { %s2320_s30 = scalar_lea.hbm %s3160_s3, 32 }
  0xbd   : > { %p2321_p13 = scmp.ne.s32.totalorder %s3160_s3, %s2320_s30  ;;  %p2327_p5 = scmp.lt.u32.totalorder %s2320_s30, %s3160_s3 }
  0xbf   : > { %p2323_p1 = pnand %p2321_p13, %p2736_p0 }
  0xc1   : > { %p2324_p6 = pneg %p2323_p1 }
  0xc3   : > { %p2329_p9 = pnand %p2327_p5, %p2324_p6 }
  0xc5   : > { %2332 = shalt.err (!%p2329_p9)
}
  0xc6   : > { %s2333_s7 = scalar_lea.vmem %s489_s2, 32  ;;  %p2341_p4 = scmp.lt.s32.totalorder %s489_s2, %s489_s2 }
  0xc7   : > { %p2334_p10 = scmp.ne.s32.totalorder %s489_s2, %s2333_s7  ;;  %p2342_p7 = scmp.lt.s32.totalorder %s2333_s7, %s2333_s7 }
  0xc9   : > { %p2336_p2 = pnand %p2334_p10, %p2736_p0  ;;  %p2343_p8 = por %p2342_p7, %p2341_p4 }
  0xcb   : > { %p2337_p3 = pneg %p2336_p2 }
  0xcd   : > { %p2344_p11 = pnand %p2343_p8, %p2337_p3 }
  0xcf   : > { %2347 = shalt.err (!%p2344_p11)
}
  0xd0   : > { %2028 = dma.hbm_to_vmem [thread:$0]  (!%p2720_p12), %s3160_s3, 32, %s489_s2, [#allocation6]  }
  0xd1   : > { %s2559_s16 = smov [#allocation10]   ;;  %s2560_s11 = smov [#allocation13]  }
  0xd2   : > { %s521_s26 = sshll.u32 %s2559_s16, 4  ;;  %s550_s28 = sshll.u32 %s2560_s11, 4  ;;  %s522_s26 = int_to_ptr.vmem [resolvable:$true] %s521_s26  ;;  %s551_s28 = int_to_ptr.vmem [resolvable:$true] %s550_s28 }
  0xd3   : > { %s2348_s1 = scalar_lea.hbm %s3166_s9, 256 }
  0xd4   : > { %p2349_p13 = scmp.ne.s32.totalorder %s3166_s9, %s2348_s1  ;;  %p2355_p5 = scmp.lt.u32.totalorder %s2348_s1, %s3166_s9 }
  0xd6   : > { %p2351_p1 = pnand %p2349_p13, %p2736_p0 }
  0xd8   : > { %p2352_p6 = pneg %p2351_p1 }
  0xda   : > { %p2357_p9 = pnand %p2355_p5, %p2352_p6 }
  0xdc   : > { %2360 = shalt.err (!%p2357_p9)
}
  0xdd   : > { %s2361_s2 = scalar_lea.vmem %s522_s26, 256  ;;  %p2369_p4 = scmp.lt.s32.totalorder %s522_s26, %s522_s26 }
  0xde   : > { %p2362_p10 = scmp.ne.s32.totalorder %s522_s26, %s2361_s2  ;;  %p2370_p7 = scmp.lt.s32.totalorder %s2361_s2, %s2361_s2 }
  0xe0   : > { %p2364_p2 = pnand %p2362_p10, %p2736_p0  ;;  %p2371_p8 = por %p2370_p7, %p2369_p4 }
  0xe2   : > { %p2365_p3 = pneg %p2364_p2 }
  0xe4   : > { %p2372_p11 = pnand %p2371_p8, %p2365_p3 }
  0xe6   : > { %2375 = shalt.err (!%p2372_p11)
}
  0xe7   : > { %2034 = dma.hbm_to_vmem [thread:$0]  (!%p2720_p12), %s3166_s9, 256, %s522_s26, [#allocation9], %s2555_s4, %s2555_s4, %s2556_s25  }
  0xe8   : > { %s2376_s22 = scalar_lea.hbm %s3169_s12, 256 }
  0xe9   : > { %p2377_p13 = scmp.ne.s32.totalorder %s3169_s12, %s2376_s22  ;;  %p2383_p5 = scmp.lt.u32.totalorder %s2376_s22, %s3169_s12 }
  0xeb   : > { %p2379_p1 = pnand %p2377_p13, %p2736_p0 }
  0xed   : > { %p2380_p6 = pneg %p2379_p1 }
  0xef   : > { %p2385_p9 = pnand %p2383_p5, %p2380_p6 }
  0xf1   : > { %2388 = shalt.err (!%p2385_p9)
}
  0xf2   : > { %s2389_s18 = scalar_lea.vmem %s551_s28, 256  ;;  %p2397_p4 = scmp.lt.s32.totalorder %s551_s28, %s551_s28 }
  0xf3   : > { %p2390_p10 = scmp.ne.s32.totalorder %s551_s28, %s2389_s18  ;;  %p2398_p7 = scmp.lt.s32.totalorder %s2389_s18, %s2389_s18 }
  0xf5   : > { %p2392_p2 = pnand %p2390_p10, %p2736_p0  ;;  %p2399_p8 = por %p2398_p7, %p2397_p4 }
  0xf7   : > { %p2393_p3 = pneg %p2392_p2 }
  0xf9   : > { %p2400_p11 = pnand %p2399_p8, %p2393_p3 }
  0xfb   : > { %2403 = shalt.err (!%p2400_p11)
}
  0xfc   : > { %2040 = dma.hbm_to_vmem [thread:$0]  (!%p2720_p12), %s3169_s12, 256, %s551_s28, [#allocation12], %s2555_s4, %s2555_s4, %s2556_s25  }
  0xfd   : > { %s2561_s23 = smov [#allocation16]   ;;  %s2562_s11 = smov [#allocation19]  }
  0xfe   : > { %s576_s16 = sshll.u32 %s2561_s23, 4  ;;  %s603_s30 = sshll.u32 %s2562_s11, 4  ;;  %s577_s16 = int_to_ptr.vmem [resolvable:$true] %s576_s16  ;;  %s604_s30 = int_to_ptr.vmem [resolvable:$true] %s603_s30 }
  0xff   : > { %s2404_s29 = scalar_lea.hbm %s3171_s14, 256 }
 0x100   : > { %p2405_p13 = scmp.ne.s32.totalorder %s3171_s14, %s2404_s29  ;;  %p2411_p5 = scmp.lt.u32.totalorder %s2404_s29, %s3171_s14 }
 0x102   : > { %p2407_p1 = pnand %p2405_p13, %p2736_p0 }
 0x104   : > { %p2408_p6 = pneg %p2407_p1 }
 0x106   : > { %p2413_p9 = pnand %p2411_p5, %p2408_p6 }
 0x108   : > { %2416 = shalt.err (!%p2413_p9)
}
 0x109   : > { %s2417_s28 = scalar_lea.vmem %s577_s16, 256  ;;  %p2425_p4 = scmp.lt.s32.totalorder %s577_s16, %s577_s16 }
 0x10a   : > { %p2418_p10 = scmp.ne.s32.totalorder %s577_s16, %s2417_s28  ;;  %p2426_p7 = scmp.lt.s32.totalorder %s2417_s28, %s2417_s28 }
 0x10c   : > { %p2420_p2 = pnand %p2418_p10, %p2736_p0  ;;  %p2427_p8 = por %p2426_p7, %p2425_p4 }
 0x10e   : > { %p2421_p3 = pneg %p2420_p2 }
 0x110   : > { %p2428_p11 = pnand %p2427_p8, %p2421_p3 }
 0x112   : > { %2431 = shalt.err (!%p2428_p11)
}
 0x113   : > { %2046 = dma.hbm_to_vmem [thread:$0]  (!%p2720_p12), %s3171_s14, 256, %s577_s16, [#allocation15], %s2555_s4, %s2555_s4, %s2556_s25  }
 0x114   : > { %s2432_s1 = scalar_lea.hbm %s3174_s17, 256 }
 0x115   : > { %p2433_p13 = scmp.ne.s32.totalorder %s3174_s17, %s2432_s1  ;;  %p2439_p5 = scmp.lt.u32.totalorder %s2432_s1, %s3174_s17 }
 0x117   : > { %p2435_p1 = pnand %p2433_p13, %p2736_p0 }
 0x119   : > { %p2436_p6 = pneg %p2435_p1 }
 0x11b   : > { %p2441_p9 = pnand %p2439_p5, %p2436_p6 }
 0x11d   : > { %2444 = shalt.err (!%p2441_p9)
}
 0x11e   : > { %s2445_s26 = scalar_lea.vmem %s604_s30, 256  ;;  %p2453_p4 = scmp.lt.s32.totalorder %s604_s30, %s604_s30 }
 0x11f   : > { %p2446_p10 = scmp.ne.s32.totalorder %s604_s30, %s2445_s26  ;;  %p2454_p7 = scmp.lt.s32.totalorder %s2445_s26, %s2445_s26 }
 0x121   : > { %p2448_p2 = pnand %p2446_p10, %p2736_p0  ;;  %p2455_p8 = por %p2454_p7, %p2453_p4 }
 0x123   : > { %p2449_p3 = pneg %p2448_p2 }
 0x125   : > { %p2456_p11 = pnand %p2455_p8, %p2449_p3 }
 0x127   : > { %2459 = shalt.err (!%p2456_p11)
}
 0x128   : > { %s3221_s4 = smov 8   ;;  %s3222_s25 = smov 128  }
 0x129   : > { %2052 = dma.hbm_to_vmem [thread:$0]  (!%p2720_p12), %s3174_s17, 256, %s604_s30, [#allocation18], %s3222_s25, %s3222_s25, %s3221_s4  }
 0x12a   : > { %p3223_p13 = scmp.ne.s32.totalorder %s3215_s24, 0 }
 0x12b   : > { %p3224_p0 = scmp.eq.s32.totalorder (!%p3223_p13), %s2684_s0, 0 }
 0x12c   : > { %627 = sbr.rel (%p3223_p13) target bundleno = 2361 (0x939), region = 92 }
 0x133   : > { %2505 = dma.done.wait (%p3224_p0), [#allocation3], 128   ;;  %p3225_p1 = pmov %p3224_p0 }
 0x134   : > { %p3226_p6 = pmov %p3224_p0 }
 0x135   : > { %2507 = vsyncadd (%p3225_p1), [#allocation3], 4294967168 }
 0x136   : > { %2509 = dma.done.wait (%p3226_p6), [#allocation6], 64   ;;  %p3227_p5 = pmov %p3224_p0 }
 0x137   : > { %p3228_p9 = pmov %p3224_p0 }
 0x138   : > { %2511 = vsyncadd (%p3227_p5), [#allocation6], 4294967232 }
 0x139   : > { %2513 = dma.done.wait (%p3228_p9), [#allocation9], 288   ;;  %p3229_p12 = pmov %p3224_p0 }
 0x13a   : > { %p3230_p10 = pmov %p3224_p0 }
 0x13b   : > { %2515 = vsyncadd (%p3229_p12), [#allocation9], 4294967008 }
 0x13c   : > { %2517 = dma.done.wait (%p3230_p10), [#allocation12], 512   ;;  %p3231_p2 = pmov %p3224_p0 }
 0x13d   : > { %p3232_p3 = pmov %p3224_p0 }
 0x13e   : > { %2519 = vsyncadd (%p3231_p2), [#allocation12], 4294966784 }
 0x13f   : > { %2521 = dma.done.wait (%p3232_p3), [#allocation15], 512   ;;  %p3233_p4 = pmov %p3224_p0 }
 0x140   : > { %p3234_p7 = pmov %p3224_p0 }
 0x141   : > { %2523 = vsyncadd (%p3233_p4), [#allocation15], 4294966784 }
 0x142   : > { %2525 = dma.done.wait (%p3234_p7), [#allocation18], 272   ;;  %p3235_p8 = pmov %p3224_p0 }
 0x143   : > { %p721_p11 = scmp.lt.s32.totalorder %s2684_s0, 1  ;;  %v2563_v0 = vmov 0.0   ;;  %vm2564_vm0 = vmmov 0   ;;  %s3236_s2 = sld [smem:[#allocation36_spill]]  ;;  %v3000_v4 = vld [vmem:[#allocation2] sm:$0xff]   ;;  %vm738_vm1 = vcmask 130048  }
 0x144   : > { %2527 = vsyncadd (%p3235_p8), [#allocation18], 4294967024  ;;  %1855 = vmatprep.subr.bf16.mxu0 %v2563_v0  ;;  %1857 = vmatprep.mubr.msk.bf16.mxu0 %vm2564_vm0, %v2563_v0  ;;  %v784_v5 = vld [vmem:[#allocation7] sm:$0x3]  ;;  %vm789_vm2 = vcmask 1041408   ;;  %vm785_vm3 = vcmask 31744  }
 0x145   : > { %s722_s24 = scalar_select %p721_p11, %s2684_s0, 1  ;;  %1861 = vmatprep.subr.bf16.mxu1 %v2563_v0  ;;  %1863 = vmatprep.mubr.msk.bf16.mxu1 %vm2564_vm0, %v2563_v0  ;;  %v791_v6 = vsel %vm789_vm2, %v784_v5, 0  ;;  %v732_v8 = vld [vmem:[#allocation5] sm:$0x3]  ;;  %v923_v14 = vld [vmem:[#allocation8] sm:$0x3] }
 0x146   : > { %1862 = vmatpush3.bf16.msra.mxu1 %v791_v6  ;;  %v838_v13 = vsel %vm789_vm2, %v732_v8, 0  ;;  %v928_v15 = vsel %vm789_vm2, %v923_v14, 0  ;;  %v973_v21 = vld [vmem:[%s3162_s5] sm:$0xff]  ;;  %v974_v24 = vld [vmem:[%s3162_s5 + $0x8] sm:$0xff]  ;;  %vm1050_vm6 = vcmask 261120   ;;  %s3237_s19 = sld [smem:[#allocation40_spill]] }
 0x147   : > { %s1817_s21 = sshll.u32 %s722_s24, 4  ;;  %1867 = vmatprep.subr.bf16.mxu1 %v2563_v0  ;;  %v977_v23 = vld [vmem:[%s3163_s6] sm:$0xff]  ;;  %v978_v28 = vld [vmem:[%s3163_s6 + $0x8] sm:$0xff]  ;;  %v2137_v48 = vld [vmem:[#allocation10 + $0x8] sm:$0xff]   ;;  %s3238_s22 = sld [smem:[#allocation41_spill]] }
 0x148   : > { %v2132_v38 = vld [vmem:[%s3165_s8] sm:$0xff]   ;;  %v2133_v39 = vld [vmem:[%s3165_s8 + $0x8] sm:$0xff]   ;;  %v2139_v55 = vld [vmem:[#allocation13 + $0x8] sm:$0xff]   ;;  %s3239_s27 = sld [smem:[#allocation29_spill]]  ;;  %s3240_s4 = sld [smem:[#allocation42_spill]] }
 0x149   : > { %s725_s23 = scalar_lea.vmem %s3236_s2, %s1817_s21  ;;  %v2136_v47 = vld [vmem:[#allocation10] sm:$0xff]   ;;  %v1255_v56 = vld [vmem:[#allocation11] sm:$0xff]  ;;  %v1256_v59 = vld [vmem:[#allocation11 + $0x8] sm:$0xff]  ;;  %s3241_s24 = sld [smem:[#allocation34_spill]] }
 0x14a   : > { %v729_v1 = vld [vmem:[%s725_s23] sm:$0xff]  ;;  %v730_v2 = vld [vmem:[%s725_s23 + $0x8] sm:$0xff]  ;;  %s1818_s21 = sshll.u32 %s2684_s0, 8  ;;  %s3242_s1 = sld [smem:[#allocation43_spill]] }
 0x14b   : > { %v731_v3 = vpack.c.bf16 %v730_v2, %v729_v1  ;;  %v2138_v54 = vld [vmem:[#allocation13] sm:$0xff]   ;;  %s2565_s18 = smov [#allocation20]  }
 0x14c   : > { %v2134_v43 = vld [vmem:[%s3237_s19] sm:$0xff]   ;;  %v2135_v46 = vld [vmem:[%s3237_s19 + $0x8] sm:$0xff]   ;;  %s2464_s26 = sshll.u32 %s2565_s18, 4  ;;  %s2465_s26 = int_to_ptr.vmem [resolvable:$false] %s2464_s26 }
 0x14d   : > { %1856 = vmatpush3.bf16.msra.mxu0 %v731_v3  ;;  %v1259_v58 = vld [vmem:[%s3238_s22] sm:$0xff]  ;;  %v1260_v63 = vld [vmem:[%s3238_s22 + $0x8] sm:$0xff] }
 0x14e   : > { %1873 = vmatprep.subr.bf16.mxu0 %v2563_v0  ;;  %s718_s7 = sand.u32 1, %s3239_s27  }
 0x14f   : > { %s1778_s25 = sshll.u32 %s718_s7, 4  ;;  %s3116_s27 = scalar_lea.sflag [#allocation4], %s718_s7 }
 0x150   : > { %1858 = vmatmul.mubr.msk.bf16.vlgmr.msra.gmra.mrb[0].mxu0 %vm738_vm1, %v3000_v4  ;;  %s720_s30 = scalar_lea.vmem [#allocation20], %s1778_s25  ;;  %s3112_s29 = scalar_lea.hbm %s3242_s1, %s1818_s21 }
 0x151   : > { %1875 = vmatprep.mubr.msk.bf16.mxu0 %vm2564_vm0, %v2563_v0  ;;  %s1583_s2 = sshll.u32 %s720_s30, 4  ;;  %p3243_p0 = scmp.ne.s32.totalorder %s3241_s24, 0  ;;  %s3114_s2 = int_to_ptr.vmem [resolvable:$true] %s1583_s2 }
 0x152   : > { %s2460_s0 = scalar_lea.vmem %s3114_s2, 256  ;;  %s2466_s25 = scalar_lea.vmem %s2465_s26, 512 }
 0x153   : > { %p2461_p13 = scmp.ne.s32.totalorder %s3114_s2, %s2460_s0  ;;  %p2467_p5 = scmp.lt.s32.totalorder %s3114_s2, %s2465_s26 }
 0x154   : > { %p2468_p9 = scmp.lt.s32.totalorder %s2466_s25, %s2460_s0 }
 0x155   : > { %p2462_p1 = pnand %p2461_p13, %p3243_p0 }
 0x156   : > { %p2469_p12 = por %p2468_p9, %p2467_p5 }
 0x157   : > { %p2463_p6 = pneg %p2462_p1 }
 0x159   : > { %p2470_p10 = pnand %p2469_p12, %p2463_p6 }
 0x223   : > { %v776_v7 = vpop.f32.mrb[0].mxu0 }
 0x224   : > { %v1859_v9 = vpop.f32.mrb[1].mxu0 }
 0x225   : > { %v779_v10 = vpop.f32.mrb[2].mxu0 }
 0x226   : > { %v783_v11 = vpack.c.bf16 %v779_v10, %v776_v7  ;;  %v1860_v12 = vpop.f32.mrb[3].mxu0 }
 0x227   : > { %v2141_v12 = vld [vmem:[#allocation14 + $0x8] sm:$0xff]  }
 0x228   : > { %1864 = vmatmul.mubr.msk.bf16.vlgmr.msra.gmra.mrb[0].mxu1 %vm785_vm3, %v783_v11  ;;  %1874 = vmatpush3.bf16.msra.mxu0 %v783_v11  ;;  %v2140_v11 = vld [vmem:[#allocation14] sm:$0xff]  }
 0x229   : > { %1868 = vmatpush3.bf16.msra.mxu1 %v838_v13  ;;  %1869 = vmatprep.mubr.msk.bf16.mxu1 %vm2564_vm0, %v2563_v0 }
 0x22a   : > { %1879 = vmatprep.subr.bf16.mxu1 %v2563_v0  ;;  %1885 = vmatprep.subr.bf16.mxu0 %v2563_v0 }
 0x22b   : > { %1876 = vmatmul.mubr.msk.bf16.vlgmr.msra.gmra.mrb[4].mxu0 %vm738_vm1, %v3000_v4 }
 0x22c   : > { %1887 = vmatprep.mubr.msk.bf16.mxu0 %vm2564_vm0, %v2563_v0 }
 0x234   : > { %1870 = vmatmul.mubr.msk.bf16.vlgmr.msra.gmra.mrb[0].mxu1 %vm785_vm3, %v731_v3 }
 0x235   : > { %1880 = vmatpush3.bf16.msra.mxu1 %v928_v15  ;;  %1881 = vmatprep.mubr.msk.bf16.mxu1 %vm2564_vm0, %v2563_v0 }
 0x236   : > { %1907 = vmatprep.subr.bf16.mxu1 %v2563_v0 }
 0x2fe   : > { %v915_v16 = vpop.f32.mrb[4].mxu0 }
 0x2ff   : > { %v1877_v17 = vpop.f32.mrb[5].mxu0 }
 0x300   : > { %v918_v18 = vpop.f32.mrb[6].mxu0 }
 0x301   : > { %v922_v19 = vpack.c.bf16 %v918_v18, %v915_v16  ;;  %v1878_v20 = vpop.f32.mrb[7].mxu0 }
 0x303   : > { %1882 = vmatmul.mubr.msk.bf16.vlgmr.msra.gmra.mrb[0].mxu1 %vm785_vm3, %v922_v19 }
 0x304   : > { %1909 = vmatprep.mubr.msk.bf16.mxu1 %vm2564_vm0, %v2563_v0 }
 0x3d6   : > { %v964_v22 = vpop.f32.mrb[0].mxu1 }
 0x3d7   : > { %v975_v25 = vmul.f32 %v973_v21, %v964_v22  ;;  %v1883_v26 = vpop.f32.mrb[1].mxu1  ;;  %v2142_v22 = vld [vmem:[#allocation16] sm:$0xff]  }
 0x3d8   : > { %v967_v27 = vpop.f32.mrb[2].mxu1 }
 0x3d9   : > { %v979_v29 = vadd.f32 %v977_v23, %v975_v25  ;;  %v976_v30 = vmul.f32 %v974_v24, %v967_v27  ;;  %v1884_v31 = vpop.f32.mrb[3].mxu1  ;;  %v2143_v23 = vld [vmem:[#allocation16 + $0x8] sm:$0xff]  }
 0x3db   : > { %v983_v32 = vmul.f32 0.01, %v979_v29  ;;  %v980_v33 = vadd.f32 %v978_v28, %v976_v30  ;;  %vm981_vm4 = vcmp.ge.f32.partialorder %v979_v29, 0.0 }
 0x3dd   : > { %vm982_vm5 = vcmp.ge.f32.partialorder %v980_v33, 0.0  ;;  %v984_v34 = vmul.f32 0.01, %v980_v33  ;;  %v985_v35 = vsel %vm981_vm4, %v979_v29, %v983_v32 }
 0x3df   : > { %v986_v36 = vsel %vm982_vm5, %v980_v33, %v984_v34 }
 0x3e0   : > { %v987_v37 = vpack.c.bf16 %v986_v36, %v985_v35  ;;  %v1809_v35 = vld [vmem:[#allocation17] ss:$0 sm:$0xff] }
 0x3e2   : > { %1886 = vmatpush3.bf16.msra.mxu0 %v987_v37 }
 0x3e3   : > { %1891 = vmatprep.subr.bf16.mxu0 %v2563_v0 }
 0x3e5   : > { %1888 = vmatmul.mubr.msk.bf16.vlgmr.msra.gmra.mrb[8].mxu0 %vm738_vm1, %v3000_v4 }
 0x3e6   : > { %1892 = vmatpush3.bf16.msra.mxu0 %v2132_v38  ;;  %1895 = vmatprep.mubr.msk.bf16.mxu0 %vm2564_vm0, %v2563_v0 }
 0x3e7   : > { %1893 = vmatprep.subr.bf16.mxu0 %v2563_v0 }
 0x3ea   : > { %1894 = vmatpush3.bf16.msra.mxu0 %v2133_v39 }
 0x3eb   : > { %1899 = vmatprep.subr.bf16.mxu0 %v2563_v0 }
 0x4b8   : > { %v1026_v40 = vpop.f32.mrb[8].mxu0 }
 0x4b9   : > { %v1889_v41 = vpop.f32.mrb[9].mxu0 }
 0x4ba   : > { %v1029_v42 = vpop.f32.mrb[10].mxu0 }
 0x4bb   : > { %v1033_v44 = vpack.c.bf16 %v1029_v42, %v1026_v40  ;;  %v1890_v45 = vpop.f32.mrb[11].mxu0 }
 0x4bd   : > { %1896 = vmatmul.mubr.msk.bf16.vlgmr.msra.gmra.mrb[12].mxu0 %vm1050_vm6, %v1033_v44  ;;  %1908 = vmatpush3.bf16.msra.mxu1 %v1033_v44 }
 0x4be   : > { %1900 = vmatpush3.bf16.msra.mxu0 %v2134_v43  ;;  %1903 = vmatprep.mubr.msk.bf16.mxu0 %vm2564_vm0, %v2563_v0 }
 0x4bf   : > { %1901 = vmatprep.subr.bf16.mxu0 %v2563_v0  ;;  %1921 = vmatprep.subr.bf16.mxu1 %v2563_v0 }
 0x4c0   : > { %1910 = vmatmul.mubr.msk.bf16.vlgmr.msra.gmra.mrb[4].mxu1 %vm738_vm1, %v3000_v4 }
 0x4c1   : > { %1923 = vmatprep.mubr.msk.bf16.mxu1 %vm2564_vm0, %v2563_v0 }
 0x4c2   : > { %1902 = vmatpush3.bf16.msra.mxu0 %v2135_v46 }
 0x4c3   : > { %1913 = vmatprep.subr.bf16.mxu0 %v2563_v0 }
 0x4c9   : > { %1904 = vmatmul.mubr.msk.bf16.vlgmr.msra.gmra.mrb[12].mxu0 %vm1050_vm6, %v987_v37 }
 0x4ca   : > { %1914 = vmatpush3.bf16.msra.mxu0 %v2136_v47  ;;  %1917 = vmatprep.mubr.msk.bf16.mxu0 %vm2564_vm0, %v2563_v0 }
 0x4cb   : > { %1915 = vmatprep.subr.bf16.mxu0 %v2563_v0 }
 0x4ce   : > { %1916 = vmatpush3.bf16.msra.mxu0 %v2137_v48  ;;  %v1545_v48 = vld [vmem:[%s3240_s4] sm:$0xff] }
 0x4cf   : > { %1935 = vmatprep.subr.bf16.mxu0 %v2563_v0 }
 0x593   : > { %v1185_v49 = vpop.f32.mrb[4].mxu1 }
 0x594   : > { %v1911_v50 = vpop.f32.mrb[5].mxu1 }
 0x595   : > { %v1188_v51 = vpop.f32.mrb[6].mxu1  ;;  %v1546_v50 = vld [vmem:[%s3240_s4 + $0x8] sm:$0xff] }
 0x596   : > { %v1192_v52 = vpack.c.bf16 %v1188_v51, %v1185_v49  ;;  %v1912_v53 = vpop.f32.mrb[7].mxu1  ;;  %v1547_v49 = vld [vmem:[#allocation19] sm:$0xff]  ;;  %v1548_v51 = vld [vmem:[#allocation19 + $0x8] sm:$0xff] }
 0x597   : > { %v1550_v53 = vsub.f32 %v1548_v51, %v1546_v50 }
 0x598   : > { %1918 = vmatmul.mubr.msk.bf16.vlgmr.msra.gmra.mrb[12].mxu0 %vm1050_vm6, %v1192_v52  ;;  %v1549_v52 = vsub.f32 %v1547_v49, %v1545_v48 }
 0x599   : > { %1939 = vmatprep.mubr.msk.bf16.mxu0 %vm2564_vm0, %v2563_v0  ;;  %1936 = vmatpush3.bf16.msra.mxu0 %v2138_v54 }
 0x59a   : > { %1937 = vmatprep.subr.bf16.mxu0 %v2563_v0 }
 0x59d   : > { %1938 = vmatpush3.bf16.msra.mxu0 %v2139_v55 }
 0x59e   : > { %1949 = vmatprep.subr.bf16.mxu0 %v2563_v0 }
 0x66b   : > { %v1246_v57 = vpop.f32.mrb[12].mxu0 }
 0x66c   : > { %v1257_v60 = vmul.f32 %v1255_v56, %v1246_v57  ;;  %v1919_v61 = vpop.f32.mrb[13].mxu0 }
 0x66d   : > { %v1249_v62 = vpop.f32.mrb[14].mxu0 }
 0x66e   : > { %v1261_v1 = vadd.f32 %v1259_v58, %v1257_v60  ;;  %v1258_v2 = vmul.f32 %v1256_v59, %v1249_v62  ;;  %v1920_v3 = vpop.f32.mrb[15].mxu0 }
 0x670   : > { %v1265_v5 = vmul.f32 0.01, %v1261_v1  ;;  %v1262_v6 = vadd.f32 %v1260_v63, %v1258_v2  ;;  %vm1263_vm7 = vcmp.ge.f32.partialorder %v1261_v1, 0.0 }
 0x672   : > { %vm1264_vm8 = vcmp.ge.f32.partialorder %v1262_v6, 0.0  ;;  %v1266_v7 = vmul.f32 0.01, %v1262_v6  ;;  %v1267_v8 = vsel %vm1263_vm7, %v1261_v1, %v1265_v5 }
 0x674   : > { %v1268_v9 = vsel %vm1264_vm8, %v1262_v6, %v1266_v7 }
 0x675   : > { %v1269_v10 = vpack.c.bf16 %v1268_v9, %v1267_v8 }
 0x677   : > { %1922 = vmatpush3.bf16.msra.mxu1 %v1269_v10  ;;  %1940 = vmatmul.mubr.msk.bf16.vlgmr.msra.gmra.mrb[16].mxu0 %vm1050_vm6, %v1269_v10 }
 0x678   : > { %1927 = vmatprep.subr.bf16.mxu1 %v2563_v0  ;;  %1953 = vmatprep.mubr.msk.bf16.mxu0 %vm2564_vm0, %v2563_v0 }
 0x679   : > { %1950 = vmatpush3.bf16.msra.mxu0 %v2142_v22 }
 0x67a   : > { %1924 = vmatmul.mubr.msk.bf16.vlgmr.msra.gmra.mrb[8].mxu1 %vm738_vm1, %v3000_v4  ;;  %1951 = vmatprep.subr.bf16.mxu0 %v2563_v0 }
 0x67b   : > { %1931 = vmatprep.mubr.msk.bf16.mxu1 %vm2564_vm0, %v2563_v0  ;;  %1928 = vmatpush3.bf16.msra.mxu1 %v2140_v11 }
 0x67c   : > { %1929 = vmatprep.subr.bf16.mxu1 %v2563_v0 }
 0x67d   : > { %1952 = vmatpush3.bf16.msra.mxu0 %v2143_v23 }
 0x67f   : > { %1930 = vmatpush3.bf16.msra.mxu1 %v2141_v12 }
 0x680   : > { %1943 = vmatprep.subr.bf16.mxu1 %v2563_v0 }
 0x74a   : > { %v1425_v13 = vpop.f32.mrb[16].mxu0 }
 0x74b   : > { %v1941_v14 = vpop.f32.mrb[17].mxu0 }
 0x74c   : > { %v1428_v15 = vpop.f32.mrb[18].mxu0 }
 0x74d   : > { %v1308_v16 = vpop.f32.mrb[8].mxu1  ;;  %v1942_v17 = vpop.f32.mrb[19].mxu0 }
 0x74e   : > { %v1925_v18 = vpop.f32.mrb[9].mxu1 }
 0x74f   : > { %v1311_v19 = vpop.f32.mrb[10].mxu1 }
 0x750   : > { %v1315_v20 = vpack.c.bf16 %v1311_v19, %v1308_v16  ;;  %v1926_v21 = vpop.f32.mrb[11].mxu1 }
 0x752   : > { %1932 = vmatmul.mubr.msk.bf16.vlgmr.msra.gmra.mrb[12].mxu1 %vm1050_vm6, %v1315_v20 }
 0x753   : > { %1944 = vmatpush3.bf16.msra.mxu1 %v1315_v20  ;;  %1945 = vmatprep.mubr.msk.bf16.mxu1 %vm2564_vm0, %v2563_v0 }
 0x75a   : > { %1946 = vmatmul.mubr.msk.bf16.vlgmr.msra.gmra.mrb[16].mxu1 %vm738_vm1, %v3000_v4 }
 0x825   : > { %v1369_v24 = vpop.f32.mrb[12].mxu1 }
 0x826   : > { %v1426_v25 = vadd.f32 %v1425_v13, %v1369_v24  ;;  %v1933_v26 = vpop.f32.mrb[13].mxu1 }
 0x827   : > { %v1372_v27 = vpop.f32.mrb[14].mxu1 }
 0x828   : > { %v1429_v28 = vadd.f32 %v1428_v15, %v1372_v27  ;;  %v1934_v29 = vpop.f32.mrb[15].mxu1 }
 0x82d   : > { %v1466_v30 = vpop.f32.mrb[16].mxu1 }
 0x82e   : > { %v1947_v31 = vpop.f32.mrb[17].mxu1 }
 0x82f   : > { %v1469_v32 = vpop.f32.mrb[18].mxu1 }
 0x830   : > { %v1473_v33 = vpack.c.bf16 %v1469_v32, %v1466_v30  ;;  %v1948_v34 = vpop.f32.mrb[19].mxu1 }
 0x832   : > { %1954 = vmatmul.mubr.msk.bf16.vlgmr.msra.gmra.mrb[20].mxu0 %vm1050_vm6, %v1473_v33 }
 0x905   : > { %v1527_v4 = vpop.f32.mrb[20].mxu0 }
 0x906   : > { %v1534_v36 = vadd.f32 %v1527_v4, %v1426_v25  ;;  %v1955_v37 = vpop.f32.mrb[21].mxu0 }
 0x907   : > { %v1530_v0 = vpop.f32.mrb[22].mxu0 }
 0x908   : > { %v1543_v38 = vadd.f32 %v1809_v35, %v1534_v36  ;;  %v1535_v39 = vadd.f32 %v1530_v0, %v1429_v28  ;;  %v1956_v40 = vpop.f32.mrb[23].mxu0 }
 0x90a   : > { %v1810_v41 = vmul.f32 -1.442695, %v1543_v38  ;;  %v1544_v42 = vadd.f32 %v1809_v35, %v1535_v39 }
 0x90c   : > { %2144 = vpow2.f32 %v1810_v41  ;;  %v1811_v43 = vmul.f32 -1.442695, %v1544_v42 }
 0x90e   : > { %2146 = vpow2.f32 %v1811_v43 }
 0x916   : > { %v2145_v44 = vpop.eup %2144 }
 0x917   : > { %v1557_v45 = vadd.f32 1.0, %v2145_v44 }
 0x918   : > { %v2147_v46 = vpop.eup %2146 }
 0x919   : > { %2148 = vrcp.f32 %v1557_v45  ;;  %v1558_v47 = vadd.f32 1.0, %v2147_v46 }
 0x91b   : > { %2150 = vrcp.f32 %v1558_v47 }
 0x923   : > { %v2149_v54 = vpop.eup %2148 }
 0x924   : > { %v1563_v55 = vmul.f32 %v2149_v54, %v1549_v52 }
 0x925   : > { %v2151_v56 = vpop.eup %2150 }
 0x926   : > { %v1565_v57 = vadd.f32 %v1563_v55, %v1545_v48  ;;  %v1564_v58 = vmul.f32 %v2151_v56, %v1550_v53 }
 0x928   : > { %v1566_v59 = vadd.f32 %v1564_v58, %v1546_v50  ;;  %1567 = vst [vmem:[%s720_s30] sm:$0xff] %v1565_v57 }
 0x92a   : > { %1568 = vst [vmem:[%s720_s30 + $0x8] sm:$0xff] %v1566_v59 }
 0x92b   : > { %2473 = shalt.err (!%p2470_p10)
}
 0x92c   : > { %s2474_s7 = scalar_lea.hbm %s3112_s29, 256  ;;  %s2478_s21 = scalar_lea.hbm %s3242_s1, 512 }
 0x92d   : > { %p2475_p2 = scmp.ne.s32.totalorder %s3112_s29, %s2474_s7  ;;  %p2479_p7 = scmp.lt.u32.totalorder %s3112_s29, %s3242_s1 }
 0x92e   : > { %p2480_p8 = scmp.lt.u32.totalorder %s2478_s21, %s2474_s7  ;;  %p2482_p13 = scmp.lt.u32.totalorder %s2474_s7, %s3112_s29 }
 0x92f   : > { %p2476_p3 = pnand %p2475_p2, %p3243_p0 }
 0x930   : > { %p2481_p11 = por %p2480_p8, %p2479_p7 }
 0x931   : > { %p2477_p4 = pneg %p2476_p3 }
 0x932   : > { %p2483_p1 = por %p2482_p13, %p2481_p11 }
 0x934   : > { %p2484_p6 = pnand %p2483_p1, %p2477_p4 }
 0x936   : > { %2487 = shalt.err (!%p2484_p6)
}
 0x937   : > { %s2566_s11 = smov 128   ;;  %s2567_s0 = smov 8  }
 0x938   : > { %2017 = dma.vmem_to_hbm [thread:$0]  (%p3243_p0), %s3114_s2, 256, %s3112_s29, %s3116_s27, %s2566_s11, %s2566_s11, %s2567_s0  }
 0x939 PF: > { %s3244_s18 = sld [smem:[#allocation31_spill]]  ;;  %s3245_s26 = sld [smem:[#allocation28_spill]] }
 0x93a   : > { %s3246_s25 = sld [smem:[#allocation35_spill]] }
 0x93f   : > { %p2079_p5 = scmp.ge.s32.totalorder %s3244_s18, 2  ;;  %s1598_s16 = sand.u32 1, %s3245_s26  }
 0x940   : > { %p3247_p9 = scmp.ne.s32.totalorder %s3246_s25, 0  ;;  %s1599_s7 = scalar_lea.sflag [#allocation4], %s1598_s16 }
 0x942   : > { %p2054_p12 = pnand %p2079_p5, %p3247_p9 }
 0x944   : > { %2529 = dma.done.wait (!%p2054_p12), %s1599_s7, 256  }
 0x945   : > { %2531 = vsyncadd (!%p2054_p12), %s1599_s7, 4294967040  ;;  %s3248_s30 = sld [smem:[#allocation32_spill]]  ;;  %s3249_s27 = sld [smem:[#allocation29_spill]] }
 0x946   : > { %s3250_s28 = sld [smem:[#allocation30_spill]]  ;;  %s3251_s29 = sld [smem:[#allocation33_spill]] }
 0x94b   : > { %p34_p10 = scmp.ge.s32.totalorder %s3248_s30, 4  }
 0x94d   :  { %36 = sbr.rel (!%p34_p10) target bundleno = 18 (0x12), region = 172 }
 0x954   :  { %1604 = vsyncpa [#allocation3], 1 }
 0x955   :  { %1606 = vsyncpa [#allocation3 + $0x1], 1 }
 0x956   :  { %1607 = vsyncpa [#allocation6], 1 }
 0x957   :  { %1608 = vsyncpa [#allocation9], 1 }
 0x958   :  { %1609 = vsyncpa [#allocation12], 1 }
 0x959   :  { %1610 = vsyncpa [#allocation15], 1 }
 0x95a   :  { %1611 = vsyncpa [#allocation18], 1 }
 0x95b   :  { %1612 = vsyncpa [#allocation4], 1 }
 0x95c   :  { %1614 = vsyncpa [#allocation4 + $0x1], 1 }

</bundles_post_ra>
